<compile_context>
chip_gen: v7x
topology: tpu7x:2x2x1
jax: 0.10.0
libtpu: 0.0.40
codegen_flags: <defaults>
</compile_context>

<pallas_src>
import functools

import jax
import jax.numpy as jnp
from jax.experimental import pallas as pl
from jax.experimental.pallas import tpu as pltpu


_ROW_BLOCK = 2048                     # target packed rows / grid step (large inputs)
_VMEM_TILE_BUDGET = 8 * 1024 * 1024   # byte budget for one (input + output) tile pair


def _mlp_kernel(x_ref, w1_ref, b1_ref, w2_ref, b2_ref, w3_ref, b3_ref,
                w4_ref, b4_ref, o_ref):
    """Fused 4-layer MLP on a packed [rows, p*S] tile (lane-dense, no transposes)."""
    cdt = w1_ref.dtype                          # MXU input dtype (bf16 by default)
    h = x_ref[...].astype(cdt)                  # cast in-kernel (no extra wrapper pass)
    h = jnp.dot(h, w1_ref[...], preferred_element_type=jnp.float32)
    h = jnp.maximum(h + b1_ref[...], 0.0).astype(cdt)
    h = jnp.dot(h, w2_ref[...], preferred_element_type=jnp.float32)
    h = jnp.maximum(h + b2_ref[...], 0.0).astype(cdt)
    h = jnp.dot(h, w3_ref[...], preferred_element_type=jnp.float32)
    h = jnp.maximum(h + b3_ref[...], 0.0).astype(cdt)
    y = jnp.dot(h, w4_ref[...], preferred_element_type=jnp.float32) + b4_ref[...]
    o_ref[...] = y.astype(o_ref.dtype)          # lane-dense store (width = p*S)


def _pick_pack_factor(sample_size, hidden_size):
    """Samples packed per kernel row so packed widths are lane-friendly (<=128)."""
    widest = max(sample_size, hidden_size)
    if widest >= 128:
        return 1
    return max(1, 128 // widest)


def _pick_row_block(n_rows, row_bytes, requested=None):
    """Packed rows per grid step.  Multiple of 8 (sublanes) or the full row count."""
    if requested is not None:
        rb = min(requested, n_rows)
        if rb != n_rows and rb % 8 != 0:
            raise ValueError(
                f"row_block={requested} must be a multiple of 8 or >= the packed "
                f"row count ({n_rows}).")
        return rb
    # Cap so the in+out tile pair (incl. double-buffering) stays well inside the
    # scoped-VMEM default (32 MiB) on all generations, v7x's 64 MiB physical incl.
    cap = max(8, ((_VMEM_TILE_BUDGET // max(row_bytes, 1)) // 8) * 8)
    target = min(_ROW_BLOCK, cap)
    if n_rows <= 2 * target:
        if n_rows <= cap:
            return n_rows            # single step: per-step overhead dominates splitting
        steps = pl.cdiv(n_rows, cap)
    else:
        steps = pl.cdiv(n_rows, target)
    if steps % 2:
        steps += 1                   # even grid -> balanced across v7x's two TensorCores
    r = -(-n_rows // steps)
    return max(8, ((r + 7) // 8) * 8)


@functools.partial(jax.jit, static_argnames=("row_block", "compute_dtype"))
def transform_distribution_forward(x, params, *, row_block=None,
                                   compute_dtype=jnp.bfloat16):
    """Pallas forward of Transform_Distribution.

    x:      [B, sample_size] (float; output keeps x.dtype, bf16-accurate by default)
    params: dict of PyTorch-layout weights w1..w4 ([out, in]) and biases b1..b4.
    row_block: packed rows per grid step (advanced; auto-chosen if None).
    """
    B, S = x.shape
    H = params["w1"].shape[0]                    # [out, in] = [hidden, sample]
    out_dtype = x.dtype
    cdt = compute_dtype

    p = _pick_pack_factor(S, H)                  # samples per packed row
    win, whid, wout = p * S, p * H, p * S        # packed layer widths

    n_rows = -(-B // p)                          # packed rows covering the batch
    row_bytes = win * x.dtype.itemsize + wout * jnp.dtype(out_dtype).itemsize
    r = _pick_row_block(n_rows, row_bytes, row_block)
    grid = pl.cdiv(n_rows, r)
    Rp = grid * r
    Bp = Rp * p

    xp = x
    if Bp != B:                                  # pad only when needed (demo: no pad)
        xp = jnp.pad(xp, ((0, Bp - B), (0, 0)))
    xp = xp.reshape(Rp, win)                     # free row-major reshape

    # Packed weights: kron(I_p, W^T) is block-diagonal, so one lane-dense matmul
    # applies the layer to all p packed samples at once (zeros add exactly 0).
    eye = jnp.eye(p, dtype=cdt)
    packw = lambda w: jnp.kron(eye, w.T.astype(cdt))            # [p*in, p*out]
    packb = lambda b: jnp.tile(b.astype(jnp.float32), p).reshape(1, -1)
    w1, w2, w3, w4 = (packw(params[k]) for k in ("w1", "w2", "w3", "w4"))
    b1, b2, b3, b4 = (packb(params[k]) for k in ("b1", "b2", "b3", "b4"))

    # Weights/biases: constant index_map -> resident across all grid steps.
    full = lambda shape: pl.BlockSpec(shape, lambda i: (0, 0))

    cdt_bytes = jnp.dtype(cdt).itemsize
    flops = 2 * Bp * (S * H + H * H + H * H + H * S)
    bytes_accessed = (Bp * S * (x.dtype.itemsize + jnp.dtype(out_dtype).itemsize)
                      + (win * whid + 2 * whid * whid + whid * wout) * cdt_bytes
                      + (3 * whid + wout) * 4)

    out_p = pl.pallas_call(
        _mlp_kernel,
        out_shape=jax.ShapeDtypeStruct((Rp, wout), out_dtype),
        grid_spec=pltpu.PrefetchScalarGridSpec(
            num_scalar_prefetch=0,
            grid=(grid,),
            in_specs=[
                pl.BlockSpec((r, win), lambda i: (i, 0)),    # packed x tile
                full((win, whid)), full((1, whid)),          # fc1
                full((whid, whid)), full((1, whid)),         # fc2
                full((whid, whid)), full((1, whid)),         # fc3
                full((whid, wout)), full((1, wout)),         # fc4
            ],
            out_specs=pl.BlockSpec((r, wout), lambda i: (i, 0)),
        ),
        compiler_params=pltpu.CompilerParams(
            dimension_semantics=("parallel",)),
        cost_estimate=pl.CostEstimate(
            flops=flops, transcendentals=0, bytes_accessed=bytes_accessed),
    )(xp, w1, b1, w2, b2, w3, b3, w4, b4)

    out = out_p.reshape(Bp, S)                   # free reshape back to [Bp, S]
    return out if Bp == B else out[:B]


def init_params(key, sample_size, hidden_size, dtype=jnp.float32):
    """PyTorch nn.Linear default init (U(-1/sqrt(fan_in), +)), [out, in] layout."""
    dims = [(hidden_size, sample_size), (hidden_size, hidden_size),
            (hidden_size, hidden_size), (sample_size, hidden_size)]
    params = {}
    for idx, (fan_out, fan_in) in enumerate(dims, start=1):
        key, kw, kb = jax.random.split(key, 3)
        bound = 1.0 / (fan_in ** 0.5)
        params[f"w{idx}"] = jax.random.uniform(
            kw, (fan_out, fan_in), dtype, minval=-bound, maxval=bound)
        params[f"b{idx}"] = jax.random.uniform(
            kb, (fan_out,), dtype, minval=-bound, maxval=bound)
    return params


def _reference_forward_f32(x, params):
    h = jnp.maximum(x @ params["w1"].T + params["b1"], 0.0)
    h = jnp.maximum(h @ params["w2"].T + params["b2"], 0.0)
    h = jnp.maximum(h @ params["w3"].T + params["b3"], 0.0)
    return h @ params["w4"].T + params["b4"]


def _reference_forward_cast_matched(x, params, compute_dtype=jnp.bfloat16):
    """Same math as the kernel (cast to compute dtype, f32 accum, f32 epilogue)."""
    cdt = compute_dtype
    h = x.astype(cdt)
    for idx in (1, 2, 3):
        acc = jnp.dot(h, params[f"w{idx}"].T.astype(cdt),
                      preferred_element_type=jnp.float32)
        h = jnp.maximum(acc + params[f"b{idx}"].astype(jnp.float32), 0.0).astype(cdt)
    acc = jnp.dot(h, params["w4"].T.astype(cdt), preferred_element_type=jnp.float32)
    return (acc + params["b4"].astype(jnp.float32)).astype(x.dtype)


if __name__ == "__main__":
    # Module semantics: hidden_size defaults to dist_input_size.  Small shapes:
    # S = H = 32 -> pack factor 4 -> 128-wide lane-dense tiles with no transposes.
    SAMPLE_SIZE = 32
    HIDDEN_SIZE = SAMPLE_SIZE
    BATCH = 256

    key = jax.random.PRNGKey(0)
    kx, kp = jax.random.split(key)
    x = jax.random.normal(kx, (BATCH, SAMPLE_SIZE), dtype=jnp.float32)
    params = init_params(kp, SAMPLE_SIZE, HIDDEN_SIZE)

    # 1) f32 compute path vs plain f32 reference (loose tol: TPU f32 matmul passes).
    out_f32 = jax.block_until_ready(
        transform_distribution_forward(x, params, compute_dtype=jnp.float32))
    ref_f32 = _reference_forward_f32(x, params)
    assert out_f32.shape == (BATCH, SAMPLE_SIZE)
    assert jnp.allclose(out_f32, ref_f32, atol=2e-2, rtol=2e-2)

    # 2) Default optimized path (bf16 weights/activations, f32 accumulation).
    out = jax.block_until_ready(transform_distribution_forward(x, params))
    ref = _reference_forward_cast_matched(x, params, jnp.bfloat16)
    assert out.shape == (BATCH, SAMPLE_SIZE)
    assert jnp.allclose(out, ref, atol=2e-2, rtol=2e-2)

    # 3) Batch not divisible by the pack factor (exercises pad / unpad path).
    x_odd = jax.random.normal(kx, (130, SAMPLE_SIZE), dtype=jnp.float32)
    out_odd = jax.block_until_ready(transform_distribution_forward(x_odd, params))
    ref_odd = _reference_forward_cast_matched(x_odd, params, jnp.bfloat16)
    assert out_odd.shape == (130, SAMPLE_SIZE)
    assert jnp.allclose(out_odd, ref_odd, atol=2e-2, rtol=2e-2)

    # 4) Forced multi-step grid (exercises pipelining + resident-weight path).
    out_grid = jax.block_until_ready(
        transform_distribution_forward(x, params, row_block=8))
    assert jnp.allclose(out_grid, ref, atol=2e-2, rtol=2e-2)

    print("KERNEL_OK")
</pallas_src>

<mosaic_0001>
module attributes {stable_mosaic.version = 11 : i64} {
  func.func @_mlp_kernel(%arg0: i32, %arg1: memref<64x128xf32, #tpu.memory_space<vmem>>, %arg2: memref<128x128xf32, #tpu.memory_space<vmem>>, %arg3: memref<1x128xf32, #tpu.memory_space<vmem>>, %arg4: memref<128x128xf32, #tpu.memory_space<vmem>>, %arg5: memref<1x128xf32, #tpu.memory_space<vmem>>, %arg6: memref<128x128xf32, #tpu.memory_space<vmem>>, %arg7: memref<1x128xf32, #tpu.memory_space<vmem>>, %arg8: memref<128x128xf32, #tpu.memory_space<vmem>>, %arg9: memref<1x128xf32, #tpu.memory_space<vmem>>, %arg10: memref<64x128xf32, #tpu.memory_space<vmem>>) attributes {dimension_semantics = [#tpu.dimension_semantics<parallel>], iteration_bounds = array<i64: 1>, scalar_prefetch = 0 : i64, scratch_operands = 0 : i64, tpu.core_type = #tpu.core_type<tc>, window_params = [{transform_indices = @transform_0, window_bounds = array<i64: 64, 128>}, {pipeline_mode = #tpu.pipeline_mode<synchronous>, transform_indices = @transform_1, window_bounds = array<i64: 128, 128>}, {pipeline_mode = #tpu.pipeline_mode<synchronous>, transform_indices = @transform_2, window_bounds = array<i64: 1, 128>}, {pipeline_mode = #tpu.pipeline_mode<synchronous>, transform_indices = @transform_3, window_bounds = array<i64: 128, 128>}, {pipeline_mode = #tpu.pipeline_mode<synchronous>, transform_indices = @transform_4, window_bounds = array<i64: 1, 128>}, {pipeline_mode = #tpu.pipeline_mode<synchronous>, transform_indices = @transform_5, window_bounds = array<i64: 128, 128>}, {pipeline_mode = #tpu.pipeline_mode<synchronous>, transform_indices = @transform_6, window_bounds = array<i64: 1, 128>}, {pipeline_mode = #tpu.pipeline_mode<synchronous>, transform_indices = @transform_7, window_bounds = array<i64: 128, 128>}, {pipeline_mode = #tpu.pipeline_mode<synchronous>, transform_indices = @transform_8, window_bounds = array<i64: 1, 128>}, {transform_indices = @transform_9, window_bounds = array<i64: 64, 128>}]} {
    %c0 = arith.constant 0 : index
    %c0_0 = arith.constant 0 : index
    %0 = vector.load %arg1[%c0, %c0_0] : memref<64x128xf32, #tpu.memory_space<vmem>>, vector<64x128xf32>
    %c0_1 = arith.constant 0 : index
    %c0_2 = arith.constant 0 : index
    %1 = vector.load %arg2[%c0_1, %c0_2] : memref<128x128xf32, #tpu.memory_space<vmem>>, vector<128x128xf32>
    %cst = arith.constant dense<0.000000e+00> : vector<64x128xf32>
    %2 = tpu.matmul %0, %1, %cst {dimension_numbers = #tpu.dot_dimension_numbers<[1], [0], [0], [1], [0, 0, 1, 1], [], []>} : vector<64x128xf32>, vector<128x128xf32>, vector<64x128xf32> -> vector<64x128xf32>
    %c0_3 = arith.constant 0 : index
    %c0_4 = arith.constant 0 : index
    %3 = vector.load %arg3[%c0_3, %c0_4] : memref<1x128xf32, #tpu.memory_space<vmem>>, vector<1x128xf32>
    %4 = vector.broadcast %3 : vector<1x128xf32> to vector<64x128xf32>
    %5 = arith.addf %2, %4 : vector<64x128xf32>
    %cst_5 = arith.constant 0.000000e+00 : f32
    %6 = vector.broadcast %cst_5 : f32 to vector<64x128xf32>
    %7 = arith.maximumf %5, %6 : vector<64x128xf32>
    %c0_6 = arith.constant 0 : index
    %c0_7 = arith.constant 0 : index
    %8 = vector.load %arg4[%c0_6, %c0_7] : memref<128x128xf32, #tpu.memory_space<vmem>>, vector<128x128xf32>
    %cst_8 = arith.constant dense<0.000000e+00> : vector<64x128xf32>
    %9 = tpu.matmul %7, %8, %cst_8 {dimension_numbers = #tpu.dot_dimension_numbers<[1], [0], [0], [1], [0, 0, 1, 1], [], []>} : vector<64x128xf32>, vector<128x128xf32>, vector<64x128xf32> -> vector<64x128xf32>
    %c0_9 = arith.constant 0 : index
    %c0_10 = arith.constant 0 : index
    %10 = vector.load %arg5[%c0_9, %c0_10] : memref<1x128xf32, #tpu.memory_space<vmem>>, vector<1x128xf32>
    %11 = vector.broadcast %10 : vector<1x128xf32> to vector<64x128xf32>
    %12 = arith.addf %9, %11 : vector<64x128xf32>
    %cst_11 = arith.constant 0.000000e+00 : f32
    %13 = vector.broadcast %cst_11 : f32 to vector<64x128xf32>
    %14 = arith.maximumf %12, %13 : vector<64x128xf32>
    %c0_12 = arith.constant 0 : index
    %c0_13 = arith.constant 0 : index
    %15 = vector.load %arg6[%c0_12, %c0_13] : memref<128x128xf32, #tpu.memory_space<vmem>>, vector<128x128xf32>
    %cst_14 = arith.constant dense<0.000000e+00> : vector<64x128xf32>
    %16 = tpu.matmul %14, %15, %cst_14 {dimension_numbers = #tpu.dot_dimension_numbers<[1], [0], [0], [1], [0, 0, 1, 1], [], []>} : vector<64x128xf32>, vector<128x128xf32>, vector<64x128xf32> -> vector<64x128xf32>
    %c0_15 = arith.constant 0 : index
    %c0_16 = arith.constant 0 : index
    %17 = vector.load %arg7[%c0_15, %c0_16] : memref<1x128xf32, #tpu.memory_space<vmem>>, vector<1x128xf32>
    %18 = vector.broadcast %17 : vector<1x128xf32> to vector<64x128xf32>
    %19 = arith.addf %16, %18 : vector<64x128xf32>
    %cst_17 = arith.constant 0.000000e+00 : f32
    %20 = vector.broadcast %cst_17 : f32 to vector<64x128xf32>
    %21 = arith.maximumf %19, %20 : vector<64x128xf32>
    %c0_18 = arith.constant 0 : index
    %c0_19 = arith.constant 0 : index
    %22 = vector.load %arg8[%c0_18, %c0_19] : memref<128x128xf32, #tpu.memory_space<vmem>>, vector<128x128xf32>
    %cst_20 = arith.constant dense<0.000000e+00> : vector<64x128xf32>
    %23 = tpu.matmul %21, %22, %cst_20 {dimension_numbers = #tpu.dot_dimension_numbers<[1], [0], [0], [1], [0, 0, 1, 1], [], []>} : vector<64x128xf32>, vector<128x128xf32>, vector<64x128xf32> -> vector<64x128xf32>
    %c0_21 = arith.constant 0 : index
    %c0_22 = arith.constant 0 : index
    %24 = vector.load %arg9[%c0_21, %c0_22] : memref<1x128xf32, #tpu.memory_space<vmem>>, vector<1x128xf32>
    %25 = vector.broadcast %24 : vector<1x128xf32> to vector<64x128xf32>
    %26 = arith.addf %23, %25 : vector<64x128xf32>
    %c0_23 = arith.constant 0 : index
    %c0_24 = arith.constant 0 : index
    %27 = vector.load %arg10[%c0_23, %c0_24] : memref<64x128xf32, #tpu.memory_space<vmem>>, vector<64x128xf32>
    tpu.vector_store %arg10[%c0_23, %c0_24], %26 {strides = array<i32>} : memref<64x128xf32, #tpu.memory_space<vmem>>, vector<64x128xf32>,
    return
  }
  func.func @transform_0(%arg0: i32) -> (i32, i32) {
    %c0_i32 = arith.constant 0 : i32
    %c0_i32_0 = arith.constant 0 : i32
    return %arg0, %c0_i32 : i32, i32
  }
  func.func @transform_1(%arg0: i32) -> (i32, i32) {
    %c0_i32 = arith.constant 0 : i32
    %c0_i32_0 = arith.constant 0 : i32
    %c0_i32_1 = arith.constant 0 : i32
    return %c0_i32, %c0_i32_0 : i32, i32
  }
  func.func @transform_2(%arg0: i32) -> (i32, i32) {
    %c0_i32 = arith.constant 0 : i32
    %c0_i32_0 = arith.constant 0 : i32
    %c0_i32_1 = arith.constant 0 : i32
    return %c0_i32, %c0_i32_0 : i32, i32
  }
  func.func @transform_3(%arg0: i32) -> (i32, i32) {
    %c0_i32 = arith.constant 0 : i32
    %c0_i32_0 = arith.constant 0 : i32
    %c0_i32_1 = arith.constant 0 : i32
    return %c0_i32, %c0_i32_0 : i32, i32
  }
  func.func @transform_4(%arg0: i32) -> (i32, i32) {
    %c0_i32 = arith.constant 0 : i32
    %c0_i32_0 = arith.constant 0 : i32
    %c0_i32_1 = arith.constant 0 : i32
    return %c0_i32, %c0_i32_0 : i32, i32
  }
  func.func @transform_5(%arg0: i32) -> (i32, i32) {
    %c0_i32 = arith.constant 0 : i32
    %c0_i32_0 = arith.constant 0 : i32
    %c0_i32_1 = arith.constant 0 : i32
    return %c0_i32, %c0_i32_0 : i32, i32
  }
  func.func @transform_6(%arg0: i32) -> (i32, i32) {
    %c0_i32 = arith.constant 0 : i32
    %c0_i32_0 = arith.constant 0 : i32
    %c0_i32_1 = arith.constant 0 : i32
    return %c0_i32, %c0_i32_0 : i32, i32
  }
  func.func @transform_7(%arg0: i32) -> (i32, i32) {
    %c0_i32 = arith.constant 0 : i32
    %c0_i32_0 = arith.constant 0 : i32
    %c0_i32_1 = arith.constant 0 : i32
    return %c0_i32, %c0_i32_0 : i32, i32
  }
  func.func @transform_8(%arg0: i32) -> (i32, i32) {
    %c0_i32 = arith.constant 0 : i32
    %c0_i32_0 = arith.constant 0 : i32
    %c0_i32_1 = arith.constant 0 : i32
    return %c0_i32, %c0_i32_0 : i32, i32
  }
  func.func @transform_9(%arg0: i32) -> (i32, i32) {
    %c0_i32 = arith.constant 0 : i32
    %c0_i32_0 = arith.constant 0 : i32
    return %arg0, %c0_i32 : i32, i32
  }
}

</mosaic_0001>

<bundles_post_ra>
// kernel: tile.23
= control target key start
LH: loop header
LB: loop body
LE: loop exit
PB: predicated region body
PF: predicated region fallthrough
CT: control target
= control target key end

     0   :  { %s22_s0 = inlined_call_operand.vmem [shape: f32[32], index: 0, kind: input, shape index: {}]   ;;  %s23_s1 = inlined_call_operand.vmem [shape: f32[4,32], index: 1, kind: output, shape index: {}]  }
   0x1   :  { %v4_v0 = vld [vmem:[%s22_s0] ss:$0 sm:$0xff] }
   0x2   :  { %5 = vst [vmem:[%s23_s1] sm:$0xf] %v4_v0 }

// kernel: tile.24
= control target key start
LH: loop header
LB: loop body
LE: loop exit
PB: predicated region body
PF: predicated region fallthrough
CT: control target
= control target key end

     0   :  { %vm7_vm0 = vcmask 261120   ;;  %s37_s8 = smov 32   ;;  %s38_s9 = smov 64   ;;  %vm13_vm1 = vcmask 1048320   ;;  %vm19_vm2 = vcmask 785920   ;;  %vm25_vm3 = vcmask 523520   ;;  %s55_s0 = inlined_call_operand.vmem [shape: f32[4,32], index: 0, kind: input, shape index: {}]   ;;  %s56_s1 = inlined_call_operand.vmem [shape: f32[1,128], index: 1, kind: output, shape index: {}]  }
   0x1   :  { %v4_v0 = vld [vmem:[%s55_s0] sm:$0xf]  ;;  %s36_s0 = smov 96  }
   0x2   :  { %5 = vst [vmem:[#allocation1] sm:$0xf] %v4_v0 }
   0x9   :  { %v10_v1 = vld [vmem:[#allocation1 + $0x3] sm:$0x1]   ;;  %v22_v2 = vld [vmem:[#allocation1 + $0x1] sm:$0x1]   ;;  %v6_v3 = vld [vmem:[#allocation1] sm:$0x1]  }
   0xa   :  { %11 = vrot.lane.b32.xlu0 %v10_v1, %s36_s0  ;;  %23 = vrot.lane.b32.xlu1 %v22_v2, %s37_s8  ;;  %v16_v4 = vld [vmem:[#allocation1 + $0x2] sm:$0x1]   ;;  %8 = vst.msk [vmem:[#allocation0] sm:$0x1] %vm7_vm0, %v6_v3  }
   0xe   :  { %17 = vrot.lane.b32.xlu0 %v16_v4, %s38_s9 }
  0x7c   :  { %v12_v5 = vpop.permute.xlu0 %11   ;;  %v24_v6 = vpop.permute.xlu1 %23  }
  0x7d   :  { %14 = vst.msk [vmem:[#allocation0] sm:$0x1] %vm13_vm1, %v12_v5  }
  0x80   :  { %v18_v7 = vpop.permute.xlu0 %17  }
  0x81   :  { %20 = vst.msk [vmem:[#allocation0] sm:$0x1] %vm19_vm2, %v18_v7  }
  0x82   :  { %26 = vst.msk [vmem:[#allocation0] sm:$0x1] %vm25_vm3, %v24_v6  }
  0x89   :  { %v30_v8 = vld [vmem:[#allocation0] sm:$0x1] }
  0x8a   :  { %32 = vst [vmem:[%s56_s1] sm:$0x1] %v30_v8 }

// kernel: transform_distribution_forward.1
= control target key start
LH: loop header
LB: loop body
LE: loop exit
PB: predicated region body
PF: predicated region fallthrough
CT: control target
= control target key end

     0   :  { %s1294_s1 = inlined_call_operand.vmem [shape: f32[128,128], index: 1, kind: input, shape index: {}]   ;;  %s1295_s0 = inlined_call_operand.vmem [shape: f32[64,128], index: 0, kind: input, shape index: {}]   ;;  %s1296_s3 = inlined_call_operand.vmem [shape: f32[128,128], index: 3, kind: input, shape index: {}]   ;;  %s1297_s5 = inlined_call_operand.vmem [shape: f32[128,128], index: 5, kind: input, shape index: {}]   ;;  %s1298_s2 = inlined_call_operand.vmem [shape: f32[1,128], index: 2, kind: input, shape index: {}]   ;;  %s1299_s7 = inlined_call_operand.vmem [shape: f32[128,128], index: 7, kind: input, shape index: {}]   ;;  %s1300_s4 = inlined_call_operand.vmem [shape: f32[1,128], index: 4, kind: input, shape index: {}]   ;;  %s1301_s6 = inlined_call_operand.vmem [shape: f32[1,128], index: 6, kind: input, shape index: {}]   ;;  %s1302_s8 = inlined_call_operand.vmem [shape: f32[1,128], index: 8, kind: input, shape index: {}]   ;;  %s1303_s9 = inlined_call_operand.vmem [shape: f32[64,128], index: 9, kind: output, shape index: {}]  }
   0x1   :  { %v40_v0 = vld [vmem:[%s1294_s1] sm:$0xff]  ;;  %v41_v1 = vld [vmem:[%s1294_s1 + $0x8] sm:$0xff]  ;;  %v42_v2 = vld [vmem:[%s1294_s1 + $0x10] sm:$0xff] }
   0x2   :  { %v864_v3 = vpack.c.bf16 %v41_v1, %v40_v0  ;;  %v43_v4 = vld [vmem:[%s1294_s1 + $0x18] sm:$0xff]  ;;  %v44_v6 = vld [vmem:[%s1294_s1 + $0x20] sm:$0xff]  ;;  %v45_v7 = vld [vmem:[%s1294_s1 + $0x28] sm:$0xff] }
   0x3   :  { %v868_v5 = vpack.c.bf16 %v43_v4, %v42_v2  ;;  %v872_v8 = vpack.c.bf16 %v45_v7, %v44_v6  ;;  %v32_v9 = vld [vmem:[%s1295_s0] sm:$0xff]  ;;  %v46_v10 = vld [vmem:[%s1294_s1 + $0x30] sm:$0xff]  ;;  %v47_v11 = vld [vmem:[%s1294_s1 + $0x38] sm:$0xff] }
   0x4   :  { %865 = vmatprep.subr.bf16.mxu0 %v864_v3  ;;  %720 = vmatprep.mubr.f32.mxu0 %v32_v9  ;;  %v176_v12 = vld [vmem:[%s1296_s3] sm:$0xff]  ;;  %v177_v13 = vld [vmem:[%s1296_s3 + $0x8] sm:$0xff]  ;;  %v178_v14 = vld [vmem:[%s1296_s3 + $0x10] sm:$0xff]  ;;  %v876_v15 = vpack.c.bf16 %v47_v11, %v46_v10 }
   0x5   :  { %867 = vmatpush3.bf16.msra.mxu0 %v864_v3  ;;  %v48_v16 = vld [vmem:[%s1294_s1 + $0x40] sm:$0xff]  ;;  %v896_v17 = vpack.c.bf16 %v177_v13, %v176_v12  ;;  %v179_v18 = vld [vmem:[%s1296_s3 + $0x18] sm:$0xff]  ;;  %v49_v19 = vld [vmem:[%s1294_s1 + $0x48] sm:$0xff] }
   0x6   :  { %869 = vmatprep.subr.bf16.mxu0 %v868_v5  ;;  %v900_v20 = vpack.c.bf16 %v179_v18, %v178_v14  ;;  %v180_v21 = vld [vmem:[%s1296_s3 + $0x20] sm:$0xff]  ;;  %v181_v22 = vld [vmem:[%s1296_s3 + $0x28] sm:$0xff]  ;;  %v880_v23 = vpack.c.bf16 %v49_v19, %v48_v16  ;;  %v50_v24 = vld [vmem:[%s1294_s1 + $0x50] sm:$0xff] }
   0x7   :  { %897 = vmatprep.subr.bf16.mxu1 %v896_v17  ;;  %v904_v25 = vpack.c.bf16 %v181_v22, %v180_v21  ;;  %v51_v26 = vld [vmem:[%s1294_s1 + $0x58] sm:$0xff]  ;;  %v182_v27 = vld [vmem:[%s1296_s3 + $0x30] sm:$0xff]  ;;  %v52_v30 = vld [vmem:[%s1294_s1 + $0x60] sm:$0xff] }
   0x8   :  { %899 = vmatpush3.bf16.msra.mxu1 %v896_v17  ;;  %v183_v28 = vld [vmem:[%s1296_s3 + $0x38] sm:$0xff]  ;;  %v884_v29 = vpack.c.bf16 %v51_v26, %v50_v24  ;;  %v53_v32 = vld [vmem:[%s1294_s1 + $0x68] sm:$0xff]  ;;  %v184_v33 = vld [vmem:[%s1296_s3 + $0x40] sm:$0xff] }
   0x9   :  { %871 = vmatpush3.bf16.msra.mxu0 %v868_v5  ;;  %901 = vmatprep.subr.bf16.mxu1 %v900_v20  ;;  %v908_v31 = vpack.c.bf16 %v183_v28, %v182_v27  ;;  %v185_v34 = vld [vmem:[%s1296_s3 + $0x48] sm:$0xff]  ;;  %v888_v35 = vpack.c.bf16 %v53_v32, %v52_v30  ;;  %v54_v36 = vld [vmem:[%s1294_s1 + $0x70] sm:$0xff]  ;;  %v55_v38 = vld [vmem:[%s1294_s1 + $0x78] sm:$0xff] }
   0xa   :  { %873 = vmatprep.subr.bf16.mxu0 %v872_v8  ;;  %v912_v37 = vpack.c.bf16 %v185_v34, %v184_v33  ;;  %v186_v39 = vld [vmem:[%s1296_s3 + $0x50] sm:$0xff]  ;;  %v187_v40 = vld [vmem:[%s1296_s3 + $0x58] sm:$0xff]  ;;  %v892_v41 = vpack.c.bf16 %v55_v38, %v54_v36  ;;  %v188_v43 = vld [vmem:[%s1296_s3 + $0x60] sm:$0xff] }
   0xb   :  { %v916_v42 = vpack.c.bf16 %v187_v40, %v186_v39  ;;  %v189_v44 = vld [vmem:[%s1296_s3 + $0x68] sm:$0xff]  ;;  %v34_v47 = vld [vmem:[%s1295_s0 + $0x10] sm:$0xff]  ;;  %v35_v48 = vld [vmem:[%s1295_s0 + $0x18] sm:$0xff] }
   0xc   :  { %903 = vmatpush3.bf16.msra.mxu1 %v900_v20  ;;  %v920_v45 = vpack.c.bf16 %v189_v44, %v188_v43  ;;  %v33_v46 = vld [vmem:[%s1295_s0 + $0x8] sm:$0xff]  ;;  %v36_v49 = vld [vmem:[%s1295_s0 + $0x20] sm:$0xff]  ;;  %v38_v51 = vld [vmem:[%s1295_s0 + $0x30] sm:$0xff] }
   0xd   :  { %875 = vmatpush3.bf16.msra.mxu0 %v872_v8  ;;  %905 = vmatprep.subr.bf16.mxu1 %v904_v25  ;;  %v37_v50 = vld [vmem:[%s1295_s0 + $0x28] sm:$0xff]  ;;  %v39_v52 = vld [vmem:[%s1295_s0 + $0x38] sm:$0xff]  ;;  %v190_v53 = vld [vmem:[%s1296_s3 + $0x70] sm:$0xff] }
   0xe   :  { %877 = vmatprep.subr.bf16.mxu0 %v876_v15  ;;  %v191_v54 = vld [vmem:[%s1296_s3 + $0x78] sm:$0xff]  ;;  %v312_v56 = vld [vmem:[%s1297_s5] sm:$0xff]  ;;  %v313_v57 = vld [vmem:[%s1297_s5 + $0x8] sm:$0xff] }
   0xf   :  { %v924_v55 = vpack.c.bf16 %v191_v54, %v190_v53  ;;  %v314_v58 = vld [vmem:[%s1297_s5 + $0x10] sm:$0xff]  ;;  %v928_v59 = vpack.c.bf16 %v313_v57, %v312_v56  ;;  %v315_v60 = vld [vmem:[%s1297_s5 + $0x18] sm:$0xff]  ;;  %v316_v62 = vld [vmem:[%s1297_s5 + $0x20] sm:$0xff] }
  0x10   :  { %907 = vmatpush3.bf16.msra.mxu1 %v904_v25  ;;  %v932_v61 = vpack.c.bf16 %v315_v60, %v314_v58  ;;  %v317_v63 = vld [vmem:[%s1297_s5 + $0x28] sm:$0xff]  ;;  %v318_v1 = vld [vmem:[%s1297_s5 + $0x30] sm:$0xff]  ;;  %v319_v2 = vld [vmem:[%s1297_s5 + $0x38] sm:$0xff] }
  0x11   :  { %879 = vmatpush3.bf16.msra.mxu0 %v876_v15  ;;  %909 = vmatprep.subr.bf16.mxu1 %v908_v31  ;;  %v936_v0 = vpack.c.bf16 %v317_v63, %v316_v62  ;;  %v940_v3 = vpack.c.bf16 %v319_v2, %v318_v1  ;;  %v320_v4 = vld [vmem:[%s1297_s5 + $0x40] sm:$0xff]  ;;  %v321_v5 = vld [vmem:[%s1297_s5 + $0x48] sm:$0xff]  ;;  %v322_v7 = vld [vmem:[%s1297_s5 + $0x50] sm:$0xff] }
  0x12   :  { %881 = vmatprep.subr.bf16.mxu0 %v880_v23  ;;  %v944_v6 = vpack.c.bf16 %v321_v5, %v320_v4  ;;  %v323_v8 = vld [vmem:[%s1297_s5 + $0x58] sm:$0xff]  ;;  %v324_v10 = vld [vmem:[%s1297_s5 + $0x60] sm:$0xff]  ;;  %v325_v11 = vld [vmem:[%s1297_s5 + $0x68] sm:$0xff] }
  0x13   :  { %v948_v9 = vpack.c.bf16 %v323_v8, %v322_v7  ;;  %v952_v12 = vpack.c.bf16 %v325_v11, %v324_v10  ;;  %v588_v13 = vld [vmem:[%s1298_s2] ss:$0 sm:$0xff]  ;;  %v326_v38 = vld [vmem:[%s1297_s5 + $0x70] sm:$0xff]  ;;  %v327_v39 = vld [vmem:[%s1297_s5 + $0x78] sm:$0xff] }
  0x14   :  { %911 = vmatpush3.bf16.msra.mxu1 %v908_v31  ;;  %v956_v40 = vpack.c.bf16 %v327_v39, %v326_v38  ;;  %v450_v43 = vld [vmem:[%s1299_s7 + $0x10] sm:$0xff]  ;;  %v456_v53 = vld [vmem:[%s1299_s7 + $0x40] sm:$0xff]  ;;  %v457_v54 = vld [vmem:[%s1299_s7 + $0x48] sm:$0xff] }
  0x15   :  { %883 = vmatpush3.bf16.msra.mxu0 %v880_v23  ;;  %913 = vmatprep.subr.bf16.mxu1 %v912_v37  ;;  %v458_v56 = vld [vmem:[%s1299_s7 + $0x50] sm:$0xff]  ;;  %v459_v57 = vld [vmem:[%s1299_s7 + $0x58] sm:$0xff]  ;;  %v461_v60 = vld [vmem:[%s1299_s7 + $0x68] sm:$0xff] }
  0x16   :  { %885 = vmatprep.subr.bf16.mxu0 %v884_v29  ;;  %v980_v58 = vpack.c.bf16 %v459_v57, %v458_v56  ;;  %v589_v62 = vld [vmem:[%s1300_s4] ss:$0 sm:$0xff] }
  0x18   :  { %915 = vmatpush3.bf16.msra.mxu1 %v912_v37 }
  0x19   :  { %887 = vmatpush3.bf16.msra.mxu0 %v884_v29  ;;  %917 = vmatprep.subr.bf16.mxu1 %v916_v42 }
  0x1a   :  { %889 = vmatprep.subr.bf16.mxu0 %v888_v35 }
  0x1c   :  { %919 = vmatpush3.bf16.msra.mxu1 %v916_v42  ;;  %v449_v42 = vld [vmem:[%s1299_s7 + $0x8] sm:$0xff] }
  0x1d   :  { %891 = vmatpush3.bf16.msra.mxu0 %v888_v35  ;;  %921 = vmatprep.subr.bf16.mxu1 %v920_v45 }
  0x1e   :  { %893 = vmatprep.subr.bf16.mxu0 %v892_v41 }
  0x20   :  { %923 = vmatpush3.bf16.msra.mxu1 %v920_v45  ;;  %v451_v45 = vld [vmem:[%s1299_s7 + $0x18] sm:$0xff] }
  0x21   :  { %895 = vmatpush3.bf16.msra.mxu0 %v892_v41  ;;  %925 = vmatprep.subr.bf16.mxu1 %v924_v55  ;;  %v448_v41 = vld [vmem:[%s1299_s7] sm:$0xff] }
  0x22   :  { %929 = vmatprep.subr.bf16.mxu0 %v928_v59  ;;  %v960_v44 = vpack.c.bf16 %v449_v42, %v448_v41 }
  0x24   :  { %721 = vmatmul.mubr.f32.vlgmr.msra.gmra.mrb[0].mxu0 %v33_v46  ;;  %927 = vmatpush3.bf16.msra.mxu1 %v924_v55  ;;  %v964_v46 = vpack.c.bf16 %v451_v45, %v450_v43  ;;  %v976_v55 = vpack.c.bf16 %v457_v54, %v456_v53 }
  0x25   :  { %723 = vmatprep.mubr.f32.mxu0 %v34_v47  ;;  %931 = vmatpush3.bf16.msra.mxu0 %v928_v59  ;;  %v452_v47 = vld [vmem:[%s1299_s7 + $0x20] sm:$0xff] }
  0x26   :  { %933 = vmatprep.subr.bf16.mxu0 %v932_v61  ;;  %961 = vmatprep.subr.bf16.mxu1 %v960_v44  ;;  %v460_v59 = vld [vmem:[%s1299_s7 + $0x60] sm:$0xff] }
  0x28   :  { %724 = vmatmul.mubr.f32.gmra.mrb[2].mxu0 %v35_v48  ;;  %v453_v48 = vld [vmem:[%s1299_s7 + $0x28] sm:$0xff] }
  0x29   :  { %726 = vmatprep.mubr.f32.mxu0 %v36_v49  ;;  %935 = vmatpush3.bf16.msra.mxu0 %v932_v61  ;;  %v968_v49 = vpack.c.bf16 %v453_v48, %v452_v47  ;;  %v984_v61 = vpack.c.bf16 %v461_v60, %v460_v59 }
  0x2a   :  { %937 = vmatprep.subr.bf16.mxu0 %v936_v0 }
  0x2c   :  { %727 = vmatmul.mubr.f32.gmra.mrb[4].mxu0 %v37_v50  ;;  %v454_v50 = vld [vmem:[%s1299_s7 + $0x30] sm:$0xff] }
  0x2d   :  { %729 = vmatprep.mubr.f32.mxu0 %v38_v51  ;;  %939 = vmatpush3.bf16.msra.mxu0 %v936_v0  ;;  %v455_v51 = vld [vmem:[%s1299_s7 + $0x38] sm:$0xff] }
  0x2e   :  { %941 = vmatprep.subr.bf16.mxu0 %v940_v3 }
  0x30   :  { %730 = vmatmul.mubr.f32.gmra.mrb[6].mxu0 %v39_v52  ;;  %v972_v52 = vpack.c.bf16 %v455_v51, %v454_v50  ;;  %v591_v51 = vld [vmem:[%s1302_s8] ss:$0 sm:$0xff] }
  0x31   :  { %943 = vmatpush3.bf16.msra.mxu0 %v940_v3 }
  0x32   :  { %945 = vmatprep.subr.bf16.mxu0 %v944_v6 }
  0x35   :  { %947 = vmatpush3.bf16.msra.mxu0 %v944_v6 }
  0x36   :  { %949 = vmatprep.subr.bf16.mxu0 %v948_v9 }
  0x39   :  { %951 = vmatpush3.bf16.msra.mxu0 %v948_v9 }
  0x3a   :  { %953 = vmatprep.subr.bf16.mxu0 %v952_v12 }
  0x3d   :  { %955 = vmatpush3.bf16.msra.mxu0 %v952_v12 }
  0x3e   :  { %957 = vmatprep.subr.bf16.mxu0 %v956_v40 }
  0x41   :  { %959 = vmatpush3.bf16.msra.mxu0 %v956_v40 }
  0xf7   :  { %v722_v14 = vpop.f32.mrb[0].mxu0 }
  0xf8   :  { %v135_v15 = vadd.f32 %v722_v14, %v588_v13  ;;  %v129_v16 = vpop.f32.mrb[1].mxu0 }
  0xf9   :  { %v130_v17 = vadd.f32 %v588_v13, %v129_v16 }
  0xfa   :  { %v169_v20 = vmax.f32 %v135_v15, 0.0 }
  0xfb   :  { %v725_v18 = vpop.f32.mrb[2].mxu0  ;;  %v168_v19 = vmax.f32 %v130_v17, 0.0 }
  0xfc   :  { %v145_v21 = vadd.f32 %v725_v18, %v588_v13  ;;  %v139_v22 = vpop.f32.mrb[3].mxu0 }
  0xfd   :  { %v140_v23 = vadd.f32 %v588_v13, %v139_v22  ;;  %764 = vmatprep.mubr.f32.mxu1 %v168_v19 }
  0xfe   :  { %765 = vmatmul.mubr.f32.vlgmr.msra.gmra.mrb[0].mxu1 %v169_v20  ;;  %v171_v26 = vmax.f32 %v145_v21, 0.0 }
  0xff   :  { %v170_v24 = vmax.f32 %v140_v23, 0.0  ;;  %v728_v25 = vpop.f32.mrb[4].mxu0  ;;  %963 = vmatpush3.bf16.msra.mxu1 %v960_v44  ;;  %v462_v23 = vld [vmem:[%s1299_s7 + $0x70] sm:$0xff] }
 0x100   :  { %v155_v27 = vadd.f32 %v728_v25, %v588_v13  ;;  %v149_v28 = vpop.f32.mrb[5].mxu0  ;;  %965 = vmatprep.subr.bf16.mxu1 %v964_v46 }
 0x101   :  { %v150_v29 = vadd.f32 %v588_v13, %v149_v28  ;;  %767 = vmatprep.mubr.f32.mxu1 %v170_v24  ;;  %v463_v24 = vld [vmem:[%s1299_s7 + $0x78] sm:$0xff] }
 0x102   :  { %768 = vmatmul.mubr.f32.gmra.mrb[2].mxu1 %v171_v26  ;;  %v173_v32 = vmax.f32 %v155_v27, 0.0  ;;  %v988_v25 = vpack.c.bf16 %v463_v24, %v462_v23  ;;  %v590_v26 = vld [vmem:[%s1301_s6] ss:$0 sm:$0xff] }
 0x103   :  { %v172_v30 = vmax.f32 %v150_v29, 0.0  ;;  %v731_v31 = vpop.f32.mrb[6].mxu0  ;;  %967 = vmatpush3.bf16.msra.mxu1 %v964_v46 }
 0x104   :  { %v165_v33 = vadd.f32 %v731_v31, %v588_v13  ;;  %v159_v34 = vpop.f32.mrb[7].mxu0  ;;  %969 = vmatprep.subr.bf16.mxu1 %v968_v49 }
 0x105   :  { %v160_v35 = vadd.f32 %v588_v13, %v159_v34  ;;  %770 = vmatprep.mubr.f32.mxu1 %v172_v30 }
 0x106   :  { %771 = vmatmul.mubr.f32.gmra.mrb[4].mxu1 %v173_v32  ;;  %v175_v37 = vmax.f32 %v165_v33, 0.0 }
 0x107   :  { %v174_v36 = vmax.f32 %v160_v35, 0.0  ;;  %971 = vmatpush3.bf16.msra.mxu1 %v968_v49 }
 0x108   :  { %973 = vmatprep.subr.bf16.mxu1 %v972_v52 }
 0x109   :  { %773 = vmatprep.mubr.f32.mxu1 %v174_v36 }
 0x10a   :  { %774 = vmatmul.mubr.f32.gmra.mrb[6].mxu1 %v175_v37 }
 0x10b   :  { %975 = vmatpush3.bf16.msra.mxu1 %v972_v52 }
 0x10c   :  { %977 = vmatprep.subr.bf16.mxu1 %v976_v55 }
 0x10f   :  { %979 = vmatpush3.bf16.msra.mxu1 %v976_v55 }
 0x110   :  { %981 = vmatprep.subr.bf16.mxu1 %v980_v58 }
 0x113   :  { %983 = vmatpush3.bf16.msra.mxu1 %v980_v58 }
 0x114   :  { %985 = vmatprep.subr.bf16.mxu1 %v984_v61 }
 0x117   :  { %987 = vmatpush3.bf16.msra.mxu1 %v984_v61 }
 0x118   :  { %989 = vmatprep.subr.bf16.mxu1 %v988_v25 }
 0x11b   :  { %991 = vmatpush3.bf16.msra.mxu1 %v988_v25 }
 0x1d1   :  { %v766_v63 = vpop.f32.mrb[0].mxu1 }
 0x1d2   :  { %v271_v0 = vadd.f32 %v766_v63, %v589_v62  ;;  %v265_v1 = vpop.f32.mrb[1].mxu1 }
 0x1d3   :  { %v266_v2 = vadd.f32 %v589_v62, %v265_v1 }
 0x1d4   :  { %v305_v5 = vmax.f32 %v271_v0, 0.0 }
 0x1d5   :  { %v304_v3 = vmax.f32 %v266_v2, 0.0  ;;  %v769_v4 = vpop.f32.mrb[2].mxu1 }
 0x1d6   :  { %v281_v6 = vadd.f32 %v769_v4, %v589_v62  ;;  %v275_v7 = vpop.f32.mrb[3].mxu1 }
 0x1d7   :  { %v276_v8 = vadd.f32 %v589_v62, %v275_v7  ;;  %808 = vmatprep.mubr.f32.mxu0 %v304_v3 }
 0x1d8   :  { %809 = vmatmul.mubr.f32.vlgmr.msra.gmra.mrb[8].mxu0 %v305_v5  ;;  %v307_v11 = vmax.f32 %v281_v6, 0.0 }
 0x1d9   :  { %v306_v9 = vmax.f32 %v276_v8, 0.0  ;;  %v772_v10 = vpop.f32.mrb[4].mxu1 }
 0x1da   :  { %v291_v12 = vadd.f32 %v772_v10, %v589_v62  ;;  %v285_v13 = vpop.f32.mrb[5].mxu1 }
 0x1db   :  { %v286_v14 = vadd.f32 %v589_v62, %v285_v13  ;;  %811 = vmatprep.mubr.f32.mxu0 %v306_v9 }
 0x1dc   :  { %812 = vmatmul.mubr.f32.gmra.mrb[10].mxu0 %v307_v11  ;;  %v309_v17 = vmax.f32 %v291_v12, 0.0 }
 0x1dd   :  { %v308_v15 = vmax.f32 %v286_v14, 0.0  ;;  %v775_v16 = vpop.f32.mrb[6].mxu1 }
 0x1de   :  { %v301_v18 = vadd.f32 %v775_v16, %v589_v62  ;;  %v295_v19 = vpop.f32.mrb[7].mxu1 }
 0x1df   :  { %v296_v20 = vadd.f32 %v589_v62, %v295_v19  ;;  %814 = vmatprep.mubr.f32.mxu0 %v308_v15 }
 0x1e0   :  { %815 = vmatmul.mubr.f32.gmra.mrb[12].mxu0 %v309_v17  ;;  %v311_v22 = vmax.f32 %v301_v18, 0.0 }
 0x1e1   :  { %v310_v21 = vmax.f32 %v296_v20, 0.0 }
 0x1e3   :  { %817 = vmatprep.mubr.f32.mxu0 %v310_v21 }
 0x1e4   :  { %818 = vmatmul.mubr.f32.gmra.mrb[14].mxu0 %v311_v22 }
 0x2ab   :  { %v810_v27 = vpop.f32.mrb[8].mxu0 }
 0x2ac   :  { %v407_v28 = vadd.f32 %v810_v27, %v590_v26  ;;  %v401_v29 = vpop.f32.mrb[9].mxu0 }
 0x2ad   :  { %v402_v30 = vadd.f32 %v590_v26, %v401_v29 }
 0x2ae   :  { %v441_v33 = vmax.f32 %v407_v28, 0.0 }
 0x2af   :  { %v440_v31 = vmax.f32 %v402_v30, 0.0  ;;  %v813_v32 = vpop.f32.mrb[10].mxu0 }
 0x2b0   :  { %v417_v34 = vadd.f32 %v813_v32, %v590_v26  ;;  %v411_v35 = vpop.f32.mrb[11].mxu0 }
 0x2b1   :  { %v412_v36 = vadd.f32 %v590_v26, %v411_v35  ;;  %852 = vmatprep.mubr.f32.mxu1 %v440_v31 }
 0x2b2   :  { %853 = vmatmul.mubr.f32.vlgmr.msra.gmra.mrb[8].mxu1 %v441_v33  ;;  %v443_v39 = vmax.f32 %v417_v34, 0.0 }
 0x2b3   :  { %v442_v37 = vmax.f32 %v412_v36, 0.0  ;;  %v816_v38 = vpop.f32.mrb[12].mxu0 }
 0x2b4   :  { %v427_v40 = vadd.f32 %v816_v38, %v590_v26  ;;  %v421_v41 = vpop.f32.mrb[13].mxu0 }
 0x2b5   :  { %v422_v42 = vadd.f32 %v590_v26, %v421_v41  ;;  %855 = vmatprep.mubr.f32.mxu1 %v442_v37 }
 0x2b6   :  { %856 = vmatmul.mubr.f32.gmra.mrb[10].mxu1 %v443_v39  ;;  %v445_v45 = vmax.f32 %v427_v40, 0.0 }
 0x2b7   :  { %v444_v43 = vmax.f32 %v422_v42, 0.0  ;;  %v819_v44 = vpop.f32.mrb[14].mxu0 }
 0x2b8   :  { %v437_v46 = vadd.f32 %v819_v44, %v590_v26  ;;  %v431_v47 = vpop.f32.mrb[15].mxu0 }
 0x2b9   :  { %v432_v48 = vadd.f32 %v590_v26, %v431_v47  ;;  %858 = vmatprep.mubr.f32.mxu1 %v444_v43 }
 0x2ba   :  { %859 = vmatmul.mubr.f32.gmra.mrb[12].mxu1 %v445_v45  ;;  %v447_v50 = vmax.f32 %v437_v46, 0.0 }
 0x2bb   :  { %v446_v49 = vmax.f32 %v432_v48, 0.0 }
 0x2bd   :  { %861 = vmatprep.mubr.f32.mxu1 %v446_v49 }
 0x2be   :  { %862 = vmatmul.mubr.f32.gmra.mrb[14].mxu1 %v447_v50 }
 0x385   :  { %v854_v52 = vpop.f32.mrb[8].mxu1 }
 0x386   :  { %v543_v53 = vadd.f32 %v854_v52, %v591_v51  ;;  %v537_v54 = vpop.f32.mrb[9].mxu1 }
 0x387   :  { %v538_v55 = vadd.f32 %v591_v51, %v537_v54 }
 0x388   :  { %577 = vst [vmem:[%s1303_s9 + $0x8] sm:$0xff] %v543_v53 }
 0x389   :  { %576 = vst [vmem:[%s1303_s9] sm:$0xff] %v538_v55  ;;  %v857_v56 = vpop.f32.mrb[10].mxu1 }
 0x38a   :  { %v553_v57 = vadd.f32 %v857_v56, %v591_v51  ;;  %v547_v58 = vpop.f32.mrb[11].mxu1 }
 0x38b   :  { %v548_v59 = vadd.f32 %v591_v51, %v547_v58 }
 0x38c   :  { %579 = vst [vmem:[%s1303_s9 + $0x18] sm:$0xff] %v553_v57 }
 0x38d   :  { %578 = vst [vmem:[%s1303_s9 + $0x10] sm:$0xff] %v548_v59  ;;  %v860_v60 = vpop.f32.mrb[12].mxu1 }
 0x38e   :  { %v563_v61 = vadd.f32 %v860_v60, %v591_v51  ;;  %v557_v62 = vpop.f32.mrb[13].mxu1 }
 0x38f   :  { %v558_v63 = vadd.f32 %v591_v51, %v557_v62 }
 0x390   :  { %581 = vst [vmem:[%s1303_s9 + $0x28] sm:$0xff] %v563_v61 }
 0x391   :  { %580 = vst [vmem:[%s1303_s9 + $0x20] sm:$0xff] %v558_v63  ;;  %v863_v0 = vpop.f32.mrb[14].mxu1 }
 0x392   :  { %v573_v1 = vadd.f32 %v863_v0, %v591_v51  ;;  %v567_v2 = vpop.f32.mrb[15].mxu1 }
 0x393   :  { %v568_v3 = vadd.f32 %v591_v51, %v567_v2 }
 0x394   :  { %583 = vst [vmem:[%s1303_s9 + $0x38] sm:$0xff] %v573_v1 }
 0x395   :  { %582 = vst [vmem:[%s1303_s9 + $0x30] sm:$0xff] %v568_v3 }

</bundles_post_ra>
